<compile_context>
chip_gen: v6e
topology: v6e:2x2x1
jax: 0.10.0
libtpu: 0.0.40
codegen_flags: <defaults>
</compile_context>

<pallas_src>
import jax
import jax.numpy as jnp
from jax.experimental import pallas as pl
from jax.experimental.pallas import tpu as pltpu


# ----------------------------------------------------------------------------
# helpers
# ----------------------------------------------------------------------------
def _round_up(x, m):
    return ((x + m - 1) // m) * m


def _pad_to(x, shape):
    pads = [(0, s - d) for d, s in zip(x.shape, shape)]
    return jnp.pad(x, pads)


# ----------------------------------------------------------------------------
# RoIAlign (single level, sampling_ratio=1) as dense matmuls -- plain JAX glue.
# TODO(synk): full torchvision MultiScaleRoIAlign (FPN level assignment,
#             adaptive sampling_ratio, aligned/half-pixel semantics) is not
#             replicated; single feature level with one sample per bin.
# ----------------------------------------------------------------------------
def roi_align_matmul(feat, rois, roi_batch_idx, output_size, spatial_scale):
    """feat: (B, C, H, W) f32; rois: (R, 4) [x1,y1,x2,y2] image coords;
    roi_batch_idx: (R,) int32. Returns (R, C, ph, pw)."""
    B, C, H, W = feat.shape
    ph, pw = output_size
    R = rois.shape[0]

    x1 = rois[:, 0] * spatial_scale
    y1 = rois[:, 1] * spatial_scale
    x2 = rois[:, 2] * spatial_scale
    y2 = rois[:, 3] * spatial_scale
    roi_w = jnp.maximum(x2 - x1, 1.0)
    roi_h = jnp.maximum(y2 - y1, 1.0)
    bin_w = roi_w / pw
    bin_h = roi_h / ph

    # sample coordinates (one sample at each bin center): (R, ph) / (R, pw)
    ys = y1[:, None] + (jnp.arange(ph, dtype=jnp.float32)[None, :] + 0.5) * bin_h[:, None]
    xs = x1[:, None] + (jnp.arange(pw, dtype=jnp.float32)[None, :] + 0.5) * bin_w[:, None]
    ys = jnp.clip(ys, 0.0, H - 1.0)
    xs = jnp.clip(xs, 0.0, W - 1.0)

    def interp_matrix(coords, size):
        # Bilinear "tent" weights: (R, P, size); exactly matches a floor/floor+1
        # gather with weights (1-frac, frac) and clamped indices.
        grid = jnp.arange(size, dtype=jnp.float32)[None, None, :]
        return jnp.maximum(1.0 - jnp.abs(coords[:, :, None] - grid), 0.0)

    Wy = interp_matrix(ys, H)          # (R, ph, H)
    Wx = interp_matrix(xs, W)          # (R, pw, W)

    # per-RoI image selection as a one-hot matmul (no gather HLO)
    onehot = (roi_batch_idx[:, None] == jnp.arange(B)[None, :]).astype(feat.dtype)
    img_r = (onehot @ feat.reshape(B, -1)).reshape(R, C, H, W)      # (R, C, H, W)

    # bilinear pooling as two batched matmuls
    pooled = jnp.einsum("rph,rchw,rqw->rcpq", Wy, img_r, Wx)        # (R, C, ph, pw)
    return pooled


# ----------------------------------------------------------------------------
# Pallas kernel: TwoMLPHead (fc6+ReLU, fc7+ReLU) + fused reg/noun/verb heads.
# Weights are pre-transposed (in, out), padded to lane multiples, bf16; biases
# stay f32. One row-tile of RoIs per grid step; weights VMEM-resident.
# ----------------------------------------------------------------------------
def roi_heads_kernel(x_ref, w6_ref, b6_ref, w7_ref, b7_ref, wh_ref, bh_ref,
                     head_ref, feat_ref):
    x = x_ref[...]                                                     # (tr, Fp) bf16
    # TwoMLPHead: fc6 -> ReLU -> fc7 -> ReLU
    h1 = jnp.dot(x, w6_ref[...], preferred_element_type=jnp.float32) + b6_ref[...]
    h1 = jnp.maximum(h1, 0.0)
    h2 = jnp.dot(h1.astype(jnp.bfloat16), w7_ref[...],
                 preferred_element_type=jnp.float32) + b7_ref[...]
    h2 = jnp.maximum(h2, 0.0)                                          # (tr, REPp) f32
    feat_ref[...] = h2                                                 # box_features
    # fused box_regressor | noun_classifier | verb_classifier (dropouts = id)
    head_ref[...] = jnp.dot(h2.astype(jnp.bfloat16), wh_ref[...],
                            preferred_element_type=jnp.float32) + bh_ref[...]


def run_roi_heads(box_feats_flat, params, n_reg, n_noun, n_verb):
    R, F = box_feats_flat.shape
    rep = params["w6"].shape[1]
    NH = n_reg + n_noun + n_verb

    F_pad = _round_up(F, 128)
    rep_pad = _round_up(rep, 128)
    NH_pad = _round_up(NH, 128)
    tile_r = min(128, _round_up(R, 8))
    R_pad = _round_up(R, tile_r)

    # pad to lane/sublane multiples; MXU operands in bf16, biases in f32
    x = _pad_to(box_feats_flat, (R_pad, F_pad)).astype(jnp.bfloat16)
    w6 = _pad_to(params["w6"], (F_pad, rep_pad)).astype(jnp.bfloat16)
    b6 = _pad_to(params["b6"], (1, rep_pad))
    w7 = _pad_to(params["w7"], (rep_pad, rep_pad)).astype(jnp.bfloat16)
    b7 = _pad_to(params["b7"], (1, rep_pad))
    whead = jnp.concatenate([params["wreg"], params["wnoun"], params["wverb"]], axis=1)
    bhead = jnp.concatenate([params["breg"], params["bnoun"], params["bverb"]], axis=1)
    whead = _pad_to(whead, (rep_pad, NH_pad)).astype(jnp.bfloat16)
    bhead = _pad_to(bhead, (1, NH_pad))

    grid = (R_pad // tile_r,)
    flops = 2 * R_pad * (F_pad * rep_pad + rep_pad * rep_pad + rep_pad * NH_pad)
    bytes_accessed = (x.size * 2 + w6.size * 2 + w7.size * 2 + whead.size * 2
                      + (b6.size + b7.size + bhead.size) * 4
                      + R_pad * (NH_pad + rep_pad) * 4)

    heads, feats = pl.pallas_call(
        roi_heads_kernel,
        out_shape=(
            jax.ShapeDtypeStruct((R_pad, NH_pad), jnp.float32),
            jax.ShapeDtypeStruct((R_pad, rep_pad), jnp.float32),
        ),
        grid=grid,
        in_specs=[
            pl.BlockSpec((tile_r, F_pad), lambda i: (i, 0)),        # x: streamed row tiles
            pl.BlockSpec((F_pad, rep_pad), lambda i: (0, 0)),       # w6: resident
            pl.BlockSpec((1, rep_pad), lambda i: (0, 0)),           # b6
            pl.BlockSpec((rep_pad, rep_pad), lambda i: (0, 0)),     # w7: resident
            pl.BlockSpec((1, rep_pad), lambda i: (0, 0)),           # b7
            pl.BlockSpec((rep_pad, NH_pad), lambda i: (0, 0)),      # fused head W
            pl.BlockSpec((1, NH_pad), lambda i: (0, 0)),            # fused head b
        ],
        out_specs=(
            pl.BlockSpec((tile_r, NH_pad), lambda i: (i, 0)),       # lane-dense slab
            pl.BlockSpec((tile_r, rep_pad), lambda i: (i, 0)),      # box_features
        ),
        compiler_params=pltpu.CompilerParams(
            dimension_semantics=("parallel",),
            vmem_limit_bytes=64 * 1024 * 1024,
        ),
        cost_estimate=pl.CostEstimate(flops=flops, transcendentals=0,
                                      bytes_accessed=bytes_accessed),
    )(x, w6, b6, w7, b7, whead, bhead)

    # slice padded outputs back to logical shapes
    box_regression = heads[:R, :n_reg]
    class_logits = heads[:R, n_reg:n_reg + n_noun]
    verb_logits = heads[:R, n_reg + n_noun:n_reg + n_noun + n_verb]
    box_features = feats[:R, :rep]
    return box_regression, class_logits, verb_logits, box_features


# ----------------------------------------------------------------------------
# Full forward (eval mode)
# ----------------------------------------------------------------------------
def roi_heads_wrapper_forward(features, proposals, image_shapes, params,
                              pool_size=(4, 4), spatial_scale=0.5):
    # concatenate per-image proposals, build batch index (what box_roi_pool does)
    rois = jnp.concatenate(proposals, axis=0)
    batch_idx = jnp.concatenate([
        jnp.full((p.shape[0],), i, dtype=jnp.int32) for i, p in enumerate(proposals)
    ])
    pooled = roi_align_matmul(features, rois, batch_idx, pool_size, spatial_scale)
    box_feats_flat = pooled.reshape(pooled.shape[0], -1)              # (R, C*ph*pw)

    n_reg = params["wreg"].shape[1]
    n_noun = params["wnoun"].shape[1]
    n_verb = params["wverb"].shape[1]
    box_regression, class_logits, verb_logits, box_features = run_roi_heads(
        box_feats_flat, params, n_reg, n_noun, n_verb)

    return {
        "class_logits": class_logits,
        "verb_logits": verb_logits,
        "ttcs": None,                 # ttc_pred = False
        "box_regression": box_regression,
        "labels": None,               # eval mode
        "reg_targets": None,          # eval mode
        "proposals": proposals,
        "box_features": box_features,
    }


# ----------------------------------------------------------------------------
# Deterministic parameter construction (matches __init__ shapes / init scheme)
# ----------------------------------------------------------------------------
def make_params(key, in_features, rep, num_classes, num_nouns, num_verbs):
    k6, k7, kr, kn, kv = jax.random.split(key, 5)
    w6 = jax.random.normal(k6, (in_features, rep), jnp.float32) * 0.02
    b6 = jnp.zeros((1, rep), jnp.float32)
    w7 = jax.random.normal(k7, (rep, rep), jnp.float32) * 0.02
    b7 = jnp.zeros((1, rep), jnp.float32)
    # heads: nn.init.normal_(std=0.01), bias = 0  (non-checkpoint path)
    wreg = jax.random.normal(kr, (rep, num_classes * 4), jnp.float32) * 0.01
    breg = jnp.zeros((1, num_classes * 4), jnp.float32)
    wnoun = jax.random.normal(kn, (rep, num_nouns), jnp.float32) * 0.01
    bnoun = jnp.zeros((1, num_nouns), jnp.float32)
    wverb = jax.random.normal(kv, (rep, num_verbs), jnp.float32) * 0.01
    bverb = jnp.zeros((1, num_verbs), jnp.float32)
    return dict(w6=w6, b6=b6, w7=w7, b7=b7,
                wreg=wreg, breg=breg, wnoun=wnoun, bnoun=bnoun,
                wverb=wverb, bverb=bverb)


if __name__ == "__main__":
    key = jax.random.PRNGKey(0)
    kf, kp1, kp2, kw = jax.random.split(key, 4)

    # small shapes: batch=2, C=4, feature map 8x8, image 16x16, pool 4x4
    B, C, H, W = 2, 4, 8, 8
    pool = (4, 4)
    rep = 32
    num_classes, num_nouns, num_verbs = 2, 16, 8

    features = jax.random.normal(kf, (B, C, H, W), jnp.float32)       # NCHW
    image_shapes = [(16, 16), (16, 16)]
    spatial_scale = H / image_shapes[0][0]                            # 0.5

    def make_props(k, n):
        xy = jax.random.uniform(k, (n, 2), minval=0.0, maxval=8.0)
        wh = jax.random.uniform(jax.random.fold_in(k, 1), (n, 2), minval=4.0, maxval=8.0)
        return jnp.concatenate([xy, xy + wh], axis=1)                 # (n,4) x1,y1,x2,y2

    proposals = [make_props(kp1, 4), make_props(kp2, 4)]              # 8 RoIs total

    params = make_params(kw, C * pool[0] * pool[1], rep,
                         num_classes, num_nouns, num_verbs)

    out = roi_heads_wrapper_forward(features, proposals, image_shapes, params,
                                    pool_size=pool, spatial_scale=spatial_scale)
    jax.block_until_ready(out["class_logits"])
    jax.block_until_ready(out["verb_logits"])
    jax.block_until_ready(out["box_regression"])
    jax.block_until_ready(out["box_features"])

    assert out["class_logits"].shape == (8, num_nouns)
    assert out["verb_logits"].shape == (8, num_verbs)
    assert out["box_regression"].shape == (8, num_classes * 4)
    assert out["box_features"].shape == (8, rep)
    assert out["ttcs"] is None and out["labels"] is None and out["reg_targets"] is None
    print("KERNEL_OK")
</pallas_src>

<mosaic_0001>
module attributes {stable_mosaic.version = 11 : i64} {
  func.func @roi_heads_kernel(%arg0: i32, %arg1: memref<8x128xbf16, #tpu.memory_space<vmem>>, %arg2: memref<128x128xbf16, #tpu.memory_space<vmem>>, %arg3: memref<1x128xf32, #tpu.memory_space<vmem>>, %arg4: memref<128x128xbf16, #tpu.memory_space<vmem>>, %arg5: memref<1x128xf32, #tpu.memory_space<vmem>>, %arg6: memref<128x128xbf16, #tpu.memory_space<vmem>>, %arg7: memref<1x128xf32, #tpu.memory_space<vmem>>, %arg8: memref<8x128xf32, #tpu.memory_space<vmem>>, %arg9: memref<8x128xf32, #tpu.memory_space<vmem>>) attributes {dimension_semantics = [#tpu.dimension_semantics<parallel>], iteration_bounds = array<i64: 1>, scalar_prefetch = 0 : i64, scratch_operands = 0 : i64, tpu.core_type = #tpu.core_type<tc>, window_params = [{transform_indices = @transform_0, window_bounds = array<i64: 8, 128>}, {pipeline_mode = #tpu.pipeline_mode<synchronous>, transform_indices = @transform_1, window_bounds = array<i64: 128, 128>}, {pipeline_mode = #tpu.pipeline_mode<synchronous>, transform_indices = @transform_2, window_bounds = array<i64: 1, 128>}, {pipeline_mode = #tpu.pipeline_mode<synchronous>, transform_indices = @transform_3, window_bounds = array<i64: 128, 128>}, {pipeline_mode = #tpu.pipeline_mode<synchronous>, transform_indices = @transform_4, window_bounds = array<i64: 1, 128>}, {pipeline_mode = #tpu.pipeline_mode<synchronous>, transform_indices = @transform_5, window_bounds = array<i64: 128, 128>}, {pipeline_mode = #tpu.pipeline_mode<synchronous>, transform_indices = @transform_6, window_bounds = array<i64: 1, 128>}, {transform_indices = @transform_7, window_bounds = array<i64: 8, 128>}, {transform_indices = @transform_8, window_bounds = array<i64: 8, 128>}]} {
    %c0 = arith.constant 0 : index
    %c0_0 = arith.constant 0 : index
    %0 = vector.load %arg1[%c0, %c0_0] : memref<8x128xbf16, #tpu.memory_space<vmem>>, vector<8x128xbf16>
    %c0_1 = arith.constant 0 : index
    %c0_2 = arith.constant 0 : index
    %1 = vector.load %arg2[%c0_1, %c0_2] : memref<128x128xbf16, #tpu.memory_space<vmem>>, vector<128x128xbf16>
    %cst = arith.constant dense<0.000000e+00> : vector<8x128xf32>
    %2 = tpu.matmul %0, %1, %cst {dimension_numbers = #tpu.dot_dimension_numbers<[1], [0], [0], [1], [0, 0, 1, 1], [], []>} : vector<8x128xbf16>, vector<128x128xbf16>, vector<8x128xf32> -> vector<8x128xf32>
    %c0_3 = arith.constant 0 : index
    %c0_4 = arith.constant 0 : index
    %3 = vector.load %arg3[%c0_3, %c0_4] : memref<1x128xf32, #tpu.memory_space<vmem>>, vector<1x128xf32>
    %4 = vector.broadcast %3 : vector<1x128xf32> to vector<8x128xf32>
    %5 = arith.addf %2, %4 : vector<8x128xf32>
    %cst_5 = arith.constant 0.000000e+00 : f32
    %6 = vector.broadcast %cst_5 : f32 to vector<8x128xf32>
    %7 = arith.maximumf %5, %6 : vector<8x128xf32>
    %8 = arith.truncf %7 : vector<8x128xf32> to vector<8x128xbf16>
    %c0_6 = arith.constant 0 : index
    %c0_7 = arith.constant 0 : index
    %9 = vector.load %arg4[%c0_6, %c0_7] : memref<128x128xbf16, #tpu.memory_space<vmem>>, vector<128x128xbf16>
    %cst_8 = arith.constant dense<0.000000e+00> : vector<8x128xf32>
    %10 = tpu.matmul %8, %9, %cst_8 {dimension_numbers = #tpu.dot_dimension_numbers<[1], [0], [0], [1], [0, 0, 1, 1], [], []>} : vector<8x128xbf16>, vector<128x128xbf16>, vector<8x128xf32> -> vector<8x128xf32>
    %c0_9 = arith.constant 0 : index
    %c0_10 = arith.constant 0 : index
    %11 = vector.load %arg5[%c0_9, %c0_10] : memref<1x128xf32, #tpu.memory_space<vmem>>, vector<1x128xf32>
    %12 = vector.broadcast %11 : vector<1x128xf32> to vector<8x128xf32>
    %13 = arith.addf %10, %12 : vector<8x128xf32>
    %cst_11 = arith.constant 0.000000e+00 : f32
    %14 = vector.broadcast %cst_11 : f32 to vector<8x128xf32>
    %15 = arith.maximumf %13, %14 : vector<8x128xf32>
    %c0_12 = arith.constant 0 : index
    %c0_13 = arith.constant 0 : index
    %16 = vector.load %arg9[%c0_12, %c0_13] : memref<8x128xf32, #tpu.memory_space<vmem>>, vector<8x128xf32>
    tpu.vector_store %arg9[%c0_12, %c0_13], %15 {strides = array<i32>} : memref<8x128xf32, #tpu.memory_space<vmem>>, vector<8x128xf32>,
    %17 = arith.truncf %15 : vector<8x128xf32> to vector<8x128xbf16>
    %c0_14 = arith.constant 0 : index
    %c0_15 = arith.constant 0 : index
    %18 = vector.load %arg6[%c0_14, %c0_15] : memref<128x128xbf16, #tpu.memory_space<vmem>>, vector<128x128xbf16>
    %cst_16 = arith.constant dense<0.000000e+00> : vector<8x128xf32>
    %19 = tpu.matmul %17, %18, %cst_16 {dimension_numbers = #tpu.dot_dimension_numbers<[1], [0], [0], [1], [0, 0, 1, 1], [], []>} : vector<8x128xbf16>, vector<128x128xbf16>, vector<8x128xf32> -> vector<8x128xf32>
    %c0_17 = arith.constant 0 : index
    %c0_18 = arith.constant 0 : index
    %20 = vector.load %arg7[%c0_17, %c0_18] : memref<1x128xf32, #tpu.memory_space<vmem>>, vector<1x128xf32>
    %21 = vector.broadcast %20 : vector<1x128xf32> to vector<8x128xf32>
    %22 = arith.addf %19, %21 : vector<8x128xf32>
    %c0_19 = arith.constant 0 : index
    %c0_20 = arith.constant 0 : index
    %23 = vector.load %arg8[%c0_19, %c0_20] : memref<8x128xf32, #tpu.memory_space<vmem>>, vector<8x128xf32>
    tpu.vector_store %arg8[%c0_19, %c0_20], %22 {strides = array<i32>} : memref<8x128xf32, #tpu.memory_space<vmem>>, vector<8x128xf32>,
    return
  }
  func.func @transform_0(%arg0: i32) -> (i32, i32) {
    %c0_i32 = arith.constant 0 : i32
    %c0_i32_0 = arith.constant 0 : i32
    return %arg0, %c0_i32 : i32, i32
  }
  func.func @transform_1(%arg0: i32) -> (i32, i32) {
    %c0_i32 = arith.constant 0 : i32
    %c0_i32_0 = arith.constant 0 : i32
    %c0_i32_1 = arith.constant 0 : i32
    return %c0_i32, %c0_i32_0 : i32, i32
  }
  func.func @transform_2(%arg0: i32) -> (i32, i32) {
    %c0_i32 = arith.constant 0 : i32
    %c0_i32_0 = arith.constant 0 : i32
    %c0_i32_1 = arith.constant 0 : i32
    return %c0_i32, %c0_i32_0 : i32, i32
  }
  func.func @transform_3(%arg0: i32) -> (i32, i32) {
    %c0_i32 = arith.constant 0 : i32
    %c0_i32_0 = arith.constant 0 : i32
    %c0_i32_1 = arith.constant 0 : i32
    return %c0_i32, %c0_i32_0 : i32, i32
  }
  func.func @transform_4(%arg0: i32) -> (i32, i32) {
    %c0_i32 = arith.constant 0 : i32
    %c0_i32_0 = arith.constant 0 : i32
    %c0_i32_1 = arith.constant 0 : i32
    return %c0_i32, %c0_i32_0 : i32, i32
  }
  func.func @transform_5(%arg0: i32) -> (i32, i32) {
    %c0_i32 = arith.constant 0 : i32
    %c0_i32_0 = arith.constant 0 : i32
    %c0_i32_1 = arith.constant 0 : i32
    return %c0_i32, %c0_i32_0 : i32, i32
  }
  func.func @transform_6(%arg0: i32) -> (i32, i32) {
    %c0_i32 = arith.constant 0 : i32
    %c0_i32_0 = arith.constant 0 : i32
    %c0_i32_1 = arith.constant 0 : i32
    return %c0_i32, %c0_i32_0 : i32, i32
  }
  func.func @transform_7(%arg0: i32) -> (i32, i32) {
    %c0_i32 = arith.constant 0 : i32
    %c0_i32_0 = arith.constant 0 : i32
    return %arg0, %c0_i32 : i32, i32
  }
  func.func @transform_8(%arg0: i32) -> (i32, i32) {
    %c0_i32 = arith.constant 0 : i32
    %c0_i32_0 = arith.constant 0 : i32
    return %arg0, %c0_i32 : i32, i32
  }
}

</mosaic_0001>

<bundles_post_ra>
// kernel: tpu_custom_call.1
= control target key start
LH: loop header
LB: loop body
LE: loop exit
PB: predicated region body
PF: predicated region fallthrough
CT: control target
= control target key end

     0   :  { %14 = vsyncpa [#allocation3], 0  ;;  %s854_s0 = inlined_call_operand.hbm [shape: bf16[8,128], index: 0, kind: input, shape index: {}]   ;;  %s855_s1 = inlined_call_operand.hbm [shape: bf16[128,128], index: 1, kind: input, shape index: {}]   ;;  %s856_s2 = inlined_call_operand.vmem [shape: f32[1,128], index: 2, kind: input, shape index: {}]   ;;  %s857_s3 = inlined_call_operand.hbm [shape: bf16[128,128], index: 3, kind: input, shape index: {}]   ;;  %s858_s4 = inlined_call_operand.vmem [shape: f32[1,128], index: 4, kind: input, shape index: {}]   ;;  %s859_s5 = inlined_call_operand.hbm [shape: bf16[128,128], index: 5, kind: input, shape index: {}]   ;;  %s860_s6 = inlined_call_operand.vmem [shape: f32[1,128], index: 6, kind: input, shape index: {}]   ;;  %s861_s7 = inlined_call_operand.hbm [shape: f32[8,128], index: 7, kind: output, shape index: {0}]   ;;  %s862_s8 = inlined_call_operand.hbm [shape: f32[8,128], index: 8, kind: output, shape index: {1}]  }
   0x1   :  { %15 = vsyncpa [#allocation6], 0 }
   0x2   :  { %16 = vsyncpa [#allocation9], 0 }
   0x3   :  { %17 = vsyncpa [#allocation4], 0 }
   0x4   :  { %18 = vsyncpa [#allocation12], 0  ;;  %s733_s27 = smov [#allocation5]  }
   0x5   :  { %s34_s28 = sshll.u32 %s733_s27, 4  ;;  %s35_s28 = int_to_ptr.vmem [resolvable:$true] %s34_s28 }
   0x6   :  { %s611_s29 = scalar_lea.vmem %s35_s28, 1024  ;;  %p616_p1 = scmp.lt.s32.totalorder %s35_s28, %s35_s28 }
   0x7   :  { %p612_p0 = scmp.ne.s32.totalorder %s35_s28, %s611_s29  ;;  %p617_p2 = scmp.lt.s32.totalorder %s611_s29, %s611_s29 }
   0x9   :  { %p618_p3 = por %p617_p2, %p616_p1 }
   0xb   :  { %p619_p4 = pnand %p618_p3, %p612_p0 }
   0xd   :  { %622 = shalt.err (!%p619_p4)
}
   0xe   :  { %s734_s30 = smov 64   ;;  %s735_s9 = smov 4  }
   0xf   :  { %40 = dma.hbm_to_vmem [thread:$0]  %s855_s1, 1024, %s35_s28, [#allocation6], %s734_s30, %s734_s30, %s735_s9  }
  0x10   :  { %s736_s12 = smov [#allocation2]   ;;  %s737_s14 = smov [#allocation7]  }
  0x11   :  { %s25_s13 = sshll.u32 %s736_s12, 4  ;;  %s48_s15 = sshll.u32 %s737_s14, 4  ;;  %s26_s13 = int_to_ptr.vmem [resolvable:$true] %s25_s13  ;;  %s49_s15 = int_to_ptr.vmem [resolvable:$true] %s48_s15 }
  0x12   :  { %s631_s16 = scalar_lea.vmem %s26_s13, 64  ;;  %p636_p6 = scmp.lt.s32.totalorder %s26_s13, %s26_s13 }
  0x13   :  { %p632_p5 = scmp.ne.s32.totalorder %s26_s13, %s631_s16  ;;  %p637_p7 = scmp.lt.s32.totalorder %s631_s16, %s631_s16 }
  0x15   :  { %p638_p8 = por %p637_p7, %p636_p6 }
  0x17   :  { %p639_p9 = pnand %p638_p8, %p632_p5 }
  0x19   :  { %642 = shalt.err (!%p639_p9)
}
  0x1a   :  { %28 = dma.hbm_to_vmem [thread:$0]  %s854_s0, 64, %s26_s13, [#allocation3]  }
  0x1b   :  { %s651_s19 = scalar_lea.vmem %s49_s15, 1024  ;;  %p656_p11 = scmp.lt.s32.totalorder %s49_s15, %s49_s15 }
  0x1c   :  { %p652_p10 = scmp.ne.s32.totalorder %s49_s15, %s651_s19  ;;  %p657_p12 = scmp.lt.s32.totalorder %s651_s19, %s651_s19 }
  0x1e   :  { %p658_p13 = por %p657_p12, %p656_p11 }
  0x20   :  { %p659_p0 = pnand %p658_p13, %p652_p10 }
  0x22   :  { %662 = shalt.err (!%p659_p0)
}
  0x23   :  { %54 = dma.hbm_to_vmem [thread:$0]  %s857_s3, 1024, %s49_s15, [#allocation6], %s734_s30, %s734_s30, %s735_s9  }
  0x24   :  { %s738_s21 = smov [#allocation8]  }
  0x25   :  { %s62_s22 = sshll.u32 %s738_s21, 4  ;;  %s63_s22 = int_to_ptr.vmem [resolvable:$true] %s62_s22 }
  0x26   :  { %s671_s23 = scalar_lea.vmem %s63_s22, 1024  ;;  %p676_p2 = scmp.lt.s32.totalorder %s63_s22, %s63_s22 }
  0x27   :  { %p672_p1 = scmp.ne.s32.totalorder %s63_s22, %s671_s23  ;;  %p677_p3 = scmp.lt.s32.totalorder %s671_s23, %s671_s23 }
  0x29   :  { %p678_p4 = por %p677_p3, %p676_p2 }
  0x2b   :  { %p679_p5 = pnand %p678_p4, %p672_p1 }
  0x2d   :  { %682 = shalt.err (!%p679_p5)
}
  0x2e   :  { %68 = dma.hbm_to_vmem [thread:$0]  %s859_s5, 1024, %s63_s22, [#allocation9], %s734_s30, %s734_s30, %s735_s9  }
  0x2f   :  { %723 = dma.done.wait [#allocation3], 64  }
  0x30   :  { %724 = vsyncadd [#allocation3], 4294967232 }
  0x31   :  { %725 = dma.done.wait [#allocation6], 2048  }
  0x32   :  { %726 = vsyncadd [#allocation6], 4294965248 }
  0x33   :  { %727 = dma.done.wait [#allocation9], 1024  }
  0x34   :  { %728 = vsyncadd [#allocation9], 4294966272  ;;  %v739_v0 = vmov 0.0   ;;  %vm740_vm0 = vmmov 0   ;;  %v579_v1 = vld [vmem:[#allocation5 + $0x38] sm:$0xff]   ;;  %v580_v2 = vld [vmem:[#allocation5 + $0x30] sm:$0xff]  }
  0x35   :  { %509 = vmatprep.subr.bf16.mxu0 %v739_v0  ;;  %525 = vmatprep.mubr.msk.bf16.mxu0 %vm740_vm0, %v739_v0  ;;  %v581_v3 = vld [vmem:[#allocation5 + $0x28] sm:$0xff]   ;;  %v587_v4 = vld [vmem:[#allocation7 + $0x38] sm:$0xff]   ;;  %v582_v5 = vld [vmem:[#allocation5 + $0x20] sm:$0xff]  }
  0x36   :  { %529 = vmatprep.subr.bf16.mxu1 %v739_v0  ;;  %545 = vmatprep.mubr.msk.bf16.mxu1 %vm740_vm0, %v739_v0  ;;  %v588_v6 = vld [vmem:[#allocation7 + $0x30] sm:$0xff]   ;;  %v583_v7 = vld [vmem:[#allocation5 + $0x18] sm:$0xff]   ;;  %v589_v8 = vld [vmem:[#allocation7 + $0x28] sm:$0xff]  }
  0x37   :  { %510 = vmatpush3.bf16.msra.mxu0 %v579_v1  ;;  %530 = vmatpush3.bf16.msra.mxu1 %v587_v4  ;;  %v584_v9 = vld [vmem:[#allocation5 + $0x10] sm:$0xff]   ;;  %v590_v10 = vld [vmem:[#allocation7 + $0x20] sm:$0xff]   ;;  %v585_v11 = vld [vmem:[#allocation5 + $0x8] sm:$0xff]  }
  0x38   :  { %511 = vmatprep.subr.bf16.mxu0 %v739_v0  ;;  %531 = vmatprep.subr.bf16.mxu1 %v739_v0  ;;  %v591_v12 = vld [vmem:[#allocation7 + $0x18] sm:$0xff]   ;;  %v586_v13 = vld [vmem:[#allocation5] sm:$0xff]   ;;  %v592_v14 = vld [vmem:[#allocation7 + $0x10] sm:$0xff]  }
  0x39   :  { %v84_v15 = vld [vmem:[#allocation2] sm:$0xf]  ;;  %v593_v16 = vld [vmem:[#allocation7 + $0x8] sm:$0xff]   ;;  %v594_v17 = vld [vmem:[#allocation7] sm:$0xff]  }
  0x3a   :  { %v595_v18 = vld [vmem:[#allocation8 + $0x38] sm:$0xff]   ;;  %v596_v19 = vld [vmem:[#allocation8 + $0x30] sm:$0xff]   ;;  %v597_v20 = vld [vmem:[#allocation8 + $0x28] sm:$0xff]  }
  0x3b   :  { %512 = vmatpush3.bf16.msra.mxu0 %v580_v2  ;;  %532 = vmatpush3.bf16.msra.mxu1 %v588_v6  ;;  %v598_v21 = vld [vmem:[#allocation8 + $0x20] sm:$0xff]   ;;  %v599_v22 = vld [vmem:[#allocation8 + $0x18] sm:$0xff]   ;;  %v600_v23 = vld [vmem:[#allocation8 + $0x10] sm:$0xff]  }
  0x3c   :  { %513 = vmatprep.subr.bf16.mxu0 %v739_v0  ;;  %533 = vmatprep.subr.bf16.mxu1 %v739_v0  ;;  %v455_v24 = vld [vmem:[%s856_s2] ss:$0 sm:$0xff]  ;;  %v601_v32 = vld [vmem:[#allocation8 + $0x8] sm:$0xff]   ;;  %v602_v33 = vld [vmem:[#allocation8] sm:$0xff]   ;;  %s741_s2 = smov [#allocation11]  }
  0x3d   :  { %v464_v34 = vld [vmem:[%s858_s4] ss:$0 sm:$0xff]  ;;  %s440_s27 = sshll.u32 %s741_s2, 4  ;;  %s441_s27 = int_to_ptr.vmem [resolvable:$true] %s440_s27 }
  0x3e   :  { %s683_s28 = scalar_lea.vmem %s441_s27, 128  ;;  %p688_p7 = scmp.lt.s32.totalorder %s441_s27, %s441_s27 }
  0x3f   :  { %514 = vmatpush3.bf16.msra.mxu0 %v581_v3  ;;  %534 = vmatpush3.bf16.msra.mxu1 %v589_v8  ;;  %p684_p6 = scmp.ne.s32.totalorder %s441_s27, %s683_s28  ;;  %p689_p8 = scmp.lt.s32.totalorder %s683_s28, %s683_s28 }
  0x40   :  { %515 = vmatprep.subr.bf16.mxu0 %v739_v0  ;;  %535 = vmatprep.subr.bf16.mxu1 %v739_v0 }
  0x41   :  { %p690_p9 = por %p689_p8, %p688_p7 }
  0x43   :  { %516 = vmatpush3.bf16.msra.mxu0 %v582_v5  ;;  %536 = vmatpush3.bf16.msra.mxu1 %v590_v10  ;;  %p691_p10 = pnand %p690_p9, %p684_p6 }
  0x44   :  { %517 = vmatprep.subr.bf16.mxu0 %v739_v0  ;;  %537 = vmatprep.subr.bf16.mxu1 %v739_v0 }
  0x47   :  { %518 = vmatpush3.bf16.msra.mxu0 %v583_v7  ;;  %538 = vmatpush3.bf16.msra.mxu1 %v591_v12 }
  0x48   :  { %519 = vmatprep.subr.bf16.mxu0 %v739_v0  ;;  %539 = vmatprep.subr.bf16.mxu1 %v739_v0 }
  0x4b   :  { %520 = vmatpush3.bf16.msra.mxu0 %v584_v9  ;;  %540 = vmatpush3.bf16.msra.mxu1 %v592_v14 }
  0x4c   :  { %521 = vmatprep.subr.bf16.mxu0 %v739_v0  ;;  %541 = vmatprep.subr.bf16.mxu1 %v739_v0 }
  0x4f   :  { %522 = vmatpush3.bf16.msra.mxu0 %v585_v11  ;;  %542 = vmatpush3.bf16.msra.mxu1 %v593_v16 }
  0x50   :  { %523 = vmatprep.subr.bf16.mxu0 %v739_v0  ;;  %543 = vmatprep.subr.bf16.mxu1 %v739_v0 }
  0x53   :  { %524 = vmatpush3.bf16.msra.mxu0 %v586_v13  ;;  %544 = vmatpush3.bf16.msra.mxu1 %v594_v17 }
  0x54   :  { %549 = vmatprep.subr.bf16.mxu0 %v739_v0 }
  0x56   :  { %526 = vmatmul.mubr.bf16.vlgmr.msra.gmra.mxu0 %v84_v15 }
  0x57   :  { %565 = vmatprep.mubr.msk.bf16.mxu0 %vm740_vm0, %v739_v0  ;;  %550 = vmatpush3.bf16.msra.mxu0 %v595_v18 }
  0x58   :  { %551 = vmatprep.subr.bf16.mxu0 %v739_v0 }
  0x5b   :  { %552 = vmatpush3.bf16.msra.mxu0 %v596_v19 }
  0x5c   :  { %553 = vmatprep.subr.bf16.mxu0 %v739_v0 }
  0x5f   :  { %554 = vmatpush3.bf16.msra.mxu0 %v597_v20 }
  0x60   :  { %555 = vmatprep.subr.bf16.mxu0 %v739_v0 }
  0x63   :  { %556 = vmatpush3.bf16.msra.mxu0 %v598_v21 }
  0x64   :  { %557 = vmatprep.subr.bf16.mxu0 %v739_v0 }
  0x67   :  { %558 = vmatpush3.bf16.msra.mxu0 %v599_v22 }
  0x68   :  { %559 = vmatprep.subr.bf16.mxu0 %v739_v0 }
  0x6b   :  { %560 = vmatpush3.bf16.msra.mxu0 %v600_v23 }
  0x6c   :  { %561 = vmatprep.subr.bf16.mxu0 %v739_v0 }
  0x6f   :  { %562 = vmatpush3.bf16.msra.mxu0 %v601_v32 }
  0x70   :  { %563 = vmatprep.subr.bf16.mxu0 %v739_v0 }
  0x73   :  { %564 = vmatpush3.bf16.msra.mxu0 %v602_v33 }
 0x116   :  { %v190_v25 = vpop.f32.mrf.mxu0 }
 0x117   :  { %v191_v26 = vadd.f32 %v455_v24, %v190_v25 }
 0x118   :  { %v527_v27 = vpop.f32.mrf.mxu0 }
 0x119   :  { %v196_v28 = vmax.f32 %v191_v26, 0.0 }
 0x11a   :  { %v193_v29 = vpop.f32.mrf.mxu0 }
 0x11b   :  { %v197_v30 = vpack.c.bf16 %v196_v28, %v196_v28 }
 0x11c   :  { %v528_v31 = vpop.f32.mrf.mxu0 }
 0x11d   :  { %546 = vmatmul.mubr.bf16.vlgmr.msra.gmra.mxu1 %v197_v30 }
 0x1dd   :  { %v303_v35 = vpop.f32.mrf.mxu1 }
 0x1de   :  { %v304_v36 = vadd.f32 %v464_v34, %v303_v35 }
 0x1df   :  { %v547_v37 = vpop.f32.mrf.mxu1 }
 0x1e0   :  { %v309_v38 = vmax.f32 %v304_v36, 0.0 }
 0x1e1   :  { %v306_v39 = vpop.f32.mrf.mxu1 }
 0x1e2   :  { %v311_v40 = vpack.c.bf16 %v309_v38, %v309_v38  ;;  %310 = vst [vmem:[#allocation11] sm:$0xff] %v309_v38 }
 0x1e3   :  { %v548_v41 = vpop.f32.mrf.mxu1 }
 0x1e4   :  { %566 = vmatmul.mubr.bf16.vlgmr.msra.gmra.mxu0 %v311_v40 }
 0x1e5   :  { %694 = shalt.err (!%p691_p10)
}
 0x1e6   :  { %443 = dma.vmem_to_hbm [thread:$0]  %s441_s27, 128, %s862_s8, [#allocation12]   ;;  %v473_v42 = vld [vmem:[%s860_s6] ss:$0 sm:$0xff] }
 0x1e7   :  { %s742_s10 = smov [#allocation10]  }
 0x1e8   :  { %s430_s11 = sshll.u32 %s742_s10, 4  ;;  %s431_s11 = int_to_ptr.vmem [resolvable:$true] %s430_s11 }
 0x1e9   :  { %s703_s12 = scalar_lea.vmem %s431_s11, 128  ;;  %p708_p12 = scmp.lt.s32.totalorder %s431_s11, %s431_s11 }
 0x1ea   :  { %p704_p11 = scmp.ne.s32.totalorder %s431_s11, %s703_s12  ;;  %p709_p13 = scmp.lt.s32.totalorder %s703_s12, %s703_s12 }
 0x1ec   :  { %p710_p0 = por %p709_p13, %p708_p12 }
 0x1ee   :  { %p711_p1 = pnand %p710_p0, %p704_p11 }
 0x2a4   :  { %v417_v43 = vpop.f32.mrf.mxu0 }
 0x2a5   :  { %v418_v44 = vadd.f32 %v473_v42, %v417_v43 }
 0x2a6   :  { %v567_v45 = vpop.f32.mrf.mxu0 }
 0x2a7   :  { %423 = vst [vmem:[#allocation10] sm:$0xff] %v418_v44 }
 0x2a8   :  { %v420_v46 = vpop.f32.mrf.mxu0 }
 0x2a9   :  { %714 = shalt.err (!%p711_p1)
}
 0x2aa   :  { %433 = dma.vmem_to_hbm [thread:$0]  %s431_s11, 128, %s861_s7, [#allocation4]   ;;  %v568_v47 = vpop.f32.mrf.mxu0 }
 0x2ab   :  { %729 = dma.done.wait [#allocation4], 128  }
 0x2ac   :  { %730 = vsyncadd [#allocation4], 4294967168 }
 0x2ad   :  { %731 = dma.done.wait [#allocation12], 128  }
 0x2ae   :  { %732 = vsyncadd [#allocation12], 4294967168 }
 0x2af   :  { %450 = vsyncpa [#allocation3], 1 }
 0x2b0   :  { %451 = vsyncpa [#allocation6], 1 }
 0x2b1   :  { %452 = vsyncpa [#allocation9], 1 }
 0x2b2   :  { %453 = vsyncpa [#allocation4], 1 }
 0x2b3   :  { %454 = vsyncpa [#allocation12], 1 }

</bundles_post_ra>
